<compile_context>
chip_gen: v6e
topology: v6e:2x2x1
jax: 0.10.0
libtpu: 0.0.40
codegen_flags: <defaults>
</compile_context>

<pallas_src>
import jax
import jax.numpy as jnp
from jax import lax
from jax.experimental import pallas as pl
from jax.experimental.pallas import tpu as pltpu

BN_EPS = 1e-5

# NT dot: contract last dim of lhs with last dim of rhs (A @ B^T).
_NT_DIMS = (((1,), (1,)), ((), ()))

_LANE = 128
_VMEM_BUDGET_BYTES = 40 << 20   # target block working set (v7x: 64 MiB/TC physical)
_VMEM_LIMIT_BYTES = 48 << 20    # overrides v5e(16)/v6e(32) MiB scoped defaults, < v7x 64 MiB
_MAX_TILE_ROWS = 4096           # diminishing returns past this (per-step overhead ~0.35us)


def _round_up(n: int, m: int) -> int:
    return ((n + m - 1) // m) * m


def _mlp_regressor_kernel(x_ref, w1t_ref, b1_ref, w2t_ref, b2_ref,
                          w3_ref, b3_ref, out_ref):
    """One batch tile.

    x_ref   : (TB, D)    input rows (bf16 by default, f32 supported)
    w1t_ref : (H1, D)    BN-folded layer-1 weight, transposed
    b1_ref  : (H1, 1)    BN-folded layer-1 bias (f32)
    w2t_ref : (H2, H1)   BN-folded layer-2 weight, transposed
    b2_ref  : (H2, 1)    BN-folded layer-2 bias (f32)
    w3_ref  : (H2, 1)    output weight column (f32)
    b3_ref  : (1, 1)     output bias scalar (SMEM, f32)
    out_ref : (1, TB)    lane-dense predictions for this tile (f32)

    All ops are column-local in the batch (lane) axis, so a partial last tile
    (out-of-bounds rows of x = stale VMEM) only affects output lanes that the
    masked writeback discards.
    """
    x = x_ref[...]                                           # (TB, D)

    # ---- layer 1: h1^T = relu(W1f^T @ x^T + b1f) ----------------------------
    # NT matmul (transpose_rhs): batch stays on the 128-lane axis; f32 accumulate.
    h = lax.dot_general(w1t_ref[...], x, _NT_DIMS,
                        preferred_element_type=jnp.float32)  # (H1, TB)
    h = jnp.maximum(h + b1_ref[...], 0.0)
    # Dropout(0.1): identity in eval mode.

    # ---- layer 2: h2^T = relu(W2f^T @ h1^T + b2f) ---------------------------
    h = h.astype(w2t_ref.dtype)                              # bf16 path: cast once
    h = jnp.dot(w2t_ref[...], h,
                preferred_element_type=jnp.float32)          # (H2, TB)
    h = jnp.maximum(h + b2_ref[...], 0.0)

    # ---- output layer: Linear(H2, 1) as VPU mul + SUBLANE (axis=0) reduce ---
    # (keep axis=0: padded/garbage lanes must stay isolated per lane)
    y = jnp.sum(h * w3_ref[...], axis=0, keepdims=True)      # (1, TB)
    out_ref[...] = y + b3_ref[0, 0]


def _pick_batch_tile(B, D, H1, H2, itemsize):
    """VMEM-budget-aware batch tile (multiple of 128 lanes).

    Accounts for lane padding of D (round_up(D,128): at D=32 the x block is 4x
    its nominal size in VMEM) and for the default double-buffering of every
    input/output block.  Also guarantees >= 2 tiles whenever B > 128 so both
    v7x TensorCores get work under dimension_semantics=("parallel",).
    """
    d_pad = _round_up(D, _LANE)
    h1_pad = _round_up(H1, _LANE)

    # Constant-index blocks (VMEM-resident, but the pipeline allocates 2 bufs).
    fixed = 2 * (H1 * d_pad + H2 * h1_pad) * itemsize            # w1t, w2t
    fixed += 2 * (H1 + H2 + H2) * _LANE * 4                      # b1, b2, w3 (f32, lane-padded)

    # Per-batch-row cost: x double buffer (lane-padded) + f32 out (sublane-padded to 8).
    per_row = 2 * d_pad * itemsize + 2 * 8 * 4

    avail = max(_VMEM_BUDGET_BYTES - fixed, 0)
    tb_cap = (avail // per_row) // _LANE * _LANE
    tb_cap = max(_LANE, min(_MAX_TILE_ROWS, tb_cap))

    # Megacore balance: split B over (at least) two tiles when possible.
    tb_balanced = _round_up(max((B + 1) // 2, 1), _LANE)
    return max(_LANE, min(tb_cap, tb_balanced))


def regressor_forward(x, folded_params, *, block_rows=None):
    """x: [B, D].  Returns predictions [B] float32.

    For best performance hand x over already in the compute dtype of the folded
    weights (bf16 by default) so no extra cast pass over x is needed.
    """
    B, D = x.shape
    w1t, b1, w2t, b2, w3, b3 = folded_params
    H1 = w1t.shape[0]
    H2 = w2t.shape[0]

    if x.dtype != w1t.dtype:
        # Caller-side cast fallback (extra HBM pass); prefer passing bf16 x.
        x = x.astype(w1t.dtype)
    itemsize = jnp.dtype(w1t.dtype).itemsize

    if block_rows is None:
        TB = _pick_batch_tile(B, D, H1, H2, itemsize)
    else:
        TB = max(_LANE, _round_up(block_rows, _LANE))

    # No padding: partial last tile (bounds-clamped read, masked writeback).
    n_tiles = pl.cdiv(B, TB)

    out = pl.pallas_call(
        _mlp_regressor_kernel,
        out_shape=jax.ShapeDtypeStruct((1, B), jnp.float32),
        grid_spec=pltpu.PrefetchScalarGridSpec(
            num_scalar_prefetch=0,
            grid=(n_tiles,),
            in_specs=[
                # streamed batch tile (double-buffered by the pipeline)
                pl.BlockSpec((TB, D), lambda i: (i, 0)),
                # weights / biases: constant block index -> stay VMEM-resident
                pl.BlockSpec((H1, D), lambda i: (0, 0)),
                pl.BlockSpec((H1, 1), lambda i: (0, 0)),
                pl.BlockSpec((H2, H1), lambda i: (0, 0)),
                pl.BlockSpec((H2, 1), lambda i: (0, 0)),
                pl.BlockSpec((H2, 1), lambda i: (0, 0)),
                # output-bias scalar in SMEM
                pl.BlockSpec(memory_space=pltpu.MemorySpace.SMEM),
            ],
            out_specs=pl.BlockSpec((1, TB), lambda i: (0, i)),
        ),
        compiler_params=pltpu.CompilerParams(
            # batch tiles are independent -> shard across TCs on v7x megacore
            # (pltpu.CORE_PARALLEL is an alternative if profiling shows the
            #  grid is not being split across the two TensorCores)
            dimension_semantics=("parallel",),
            vmem_limit_bytes=_VMEM_LIMIT_BYTES,
        ),
    )(x, w1t, b1, w2t, b2, w3, b3)

    return out[0, :B]  # squeeze(-1) semantics -> [B]


def fold_params(raw_params, compute_dtype=jnp.bfloat16):
    """Fold eval-mode BatchNorm into the Linear weights (once, in f32) and
    transpose to the feature-major layout the kernel expects.

    compute_dtype: dtype of the matmul operands.  Default bf16 (halves HBM
    traffic on the dominant x stream; MXU-native).  Biases and the output head
    stay f32; accumulation is always f32.  This is an intentional
    mixed-precision deviation from the f32 PyTorch reference."""
    (w1, b1, g1, beta1, rm1, rv1,
     w2, b2, g2, beta2, rm2, rv2,
     w3, b3) = raw_params

    def fold(w, b, g, beta, rm, rv):
        s = g * lax.rsqrt(rv + BN_EPS)        # (1, H)
        wf = w * s                            # (Din, H)
        bf = (b - rm) * s + beta              # (1, H)
        return wf, bf

    w1f, b1f = fold(w1, b1, g1, beta1, rm1, rv1)
    w2f, b2f = fold(w2, b2, g2, beta2, rm2, rv2)

    w1t = jnp.asarray(w1f.T, dtype=compute_dtype)      # (H1, D)
    w2t = jnp.asarray(w2f.T, dtype=compute_dtype)      # (H2, H1)
    b1c = jnp.asarray(b1f.T, dtype=jnp.float32)        # (H1, 1)
    b2c = jnp.asarray(b2f.T, dtype=jnp.float32)        # (H2, 1)
    w3c = jnp.asarray(w3, dtype=jnp.float32)           # (H2, 1)
    b3c = jnp.asarray(b3, dtype=jnp.float32).reshape(1, 1)
    return (w1t, b1c, w2t, b2c, w3c, b3c)


def init_params(key, input_dim, hidden_dims=(128, 64)):
    """Deterministic synthetic parameters (PyTorch-default-like shapes),
    with non-trivial BatchNorm statistics so the BN fold is exercised."""
    H1, H2 = hidden_dims
    ks = jax.random.split(key, 14)

    def lin(kw, kb, din, dout):
        bound = 1.0 / (float(din) ** 0.5)
        w = jax.random.uniform(kw, (din, dout), jnp.float32, -bound, bound)
        b = jax.random.uniform(kb, (1, dout), jnp.float32, -bound, bound)
        return w, b

    w1, b1 = lin(ks[0], ks[1], input_dim, H1)
    w2, b2 = lin(ks[2], ks[3], H1, H2)
    w3, b3 = lin(ks[4], ks[5], H2, 1)

    def bn(kg, kb, km, kv, h):
        g = jax.random.uniform(kg, (1, h), jnp.float32, 0.5, 1.5)
        beta = 0.1 * jax.random.normal(kb, (1, h), jnp.float32)
        rm = 0.1 * jax.random.normal(km, (1, h), jnp.float32)
        rv = jax.random.uniform(kv, (1, h), jnp.float32, 0.5, 1.5)
        return g, beta, rm, rv

    g1, beta1, rm1, rv1 = bn(ks[6], ks[7], ks[8], ks[9], H1)
    g2, beta2, rm2, rv2 = bn(ks[10], ks[11], ks[12], ks[13], H2)

    return (w1, b1, g1, beta1, rm1, rv1,
            w2, b2, g2, beta2, rm2, rv2,
            w3, b3)


def reference_forward(x, raw_params):
    """Plain-JAX reference of the same eval-mode forward pass (unfolded BN)."""
    (w1, b1, g1, beta1, rm1, rv1,
     w2, b2, g2, beta2, rm2, rv2,
     w3, b3) = raw_params
    h = x @ w1 + b1
    h = (h - rm1) / jnp.sqrt(rv1 + BN_EPS) * g1 + beta1
    h = jnp.maximum(h, 0.0)
    h = h @ w2 + b2
    h = (h - rm2) / jnp.sqrt(rv2 + BN_EPS) * g2 + beta2
    h = jnp.maximum(h, 0.0)
    y = h @ w3 + b3
    return y[:, 0]


if __name__ == "__main__":
    # TODO(synk): Dropout is stochastic in train mode; eval-mode (identity)
    # semantics are implemented here, with BatchNorm in eval mode as well.
    key = jax.random.PRNGKey(0)
    k_x, k_x2, k_p = jax.random.split(key, 3)

    D = 32  # input_dim (graph-embedding dim)
    raw_params = init_params(k_p, D, hidden_dims=(128, 64))

    # --- f32 path, single (partial, B < TB) tile, tight tolerance -------------
    folded_f32 = fold_params(raw_params, jnp.float32)
    B = 8
    x = jax.random.normal(k_x, (B, D), jnp.float32)
    y = jax.block_until_ready(regressor_forward(x, folded_f32))
    y_ref = reference_forward(x, raw_params)
    assert y.shape == (B,)
    assert jnp.allclose(y, y_ref, atol=1e-4, rtol=1e-4), "f32 mismatch vs reference"

    # --- multi-tile grid, NO padding, partial last tile, f32 ------------------
    B2 = 300
    x2 = jax.random.normal(k_x2, (B2, D), jnp.float32)
    y2 = jax.block_until_ready(regressor_forward(x2, folded_f32))
    y2_ref = reference_forward(x2, raw_params)
    assert y2.shape == (B2,)
    assert jnp.allclose(y2, y2_ref, atol=1e-4, rtol=1e-4), "tiled f32 mismatch"

    # --- default bf16 streaming path (caller hands bf16 x; f32 accumulation) --
    folded_bf16 = fold_params(raw_params)          # default compute_dtype = bf16
    y3 = jax.block_until_ready(
        regressor_forward(x2.astype(jnp.bfloat16), folded_bf16))
    assert y3.shape == (B2,)
    assert jnp.allclose(y3, y2_ref, atol=1e-1, rtol=1e-1), "bf16 mismatch"

    # --- explicit block_rows override still works (small tile, 3 grid steps) --
    y4 = jax.block_until_ready(
        regressor_forward(x2.astype(jnp.bfloat16), folded_bf16, block_rows=128))
    assert jnp.allclose(y4, y2_ref, atol=1e-1, rtol=1e-1), "block_rows override mismatch"

    print("KERNEL_OK")
</pallas_src>

<mosaic_0001>
module attributes {stable_mosaic.version = 11 : i64} {
  func.func @_mlp_regressor_kernel(%arg0: i32, %arg1: memref<128x32xf32, #tpu.memory_space<vmem>>, %arg2: memref<128x32xf32, #tpu.memory_space<vmem>>, %arg3: memref<128x1xf32, #tpu.memory_space<vmem>>, %arg4: memref<64x128xf32, #tpu.memory_space<vmem>>, %arg5: memref<64x1xf32, #tpu.memory_space<vmem>>, %arg6: memref<64x1xf32, #tpu.memory_space<vmem>>, %arg7: memref<1x1xf32, #tpu.memory_space<smem>>, %arg8: memref<1x128xf32, #tpu.memory_space<vmem>>) attributes {dimension_semantics = [#tpu.dimension_semantics<parallel>], iteration_bounds = array<i64: 1>, scalar_prefetch = 0 : i64, scratch_operands = 0 : i64, tpu.core_type = #tpu.core_type<tc>, window_params = [{transform_indices = @transform_0, window_bounds = array<i64: 128, 32>}, {pipeline_mode = #tpu.pipeline_mode<synchronous>, transform_indices = @transform_1, window_bounds = array<i64: 128, 32>}, {pipeline_mode = #tpu.pipeline_mode<synchronous>, transform_indices = @transform_2, window_bounds = array<i64: 128, 1>}, {pipeline_mode = #tpu.pipeline_mode<synchronous>, transform_indices = @transform_3, window_bounds = array<i64: 64, 128>}, {pipeline_mode = #tpu.pipeline_mode<synchronous>, transform_indices = @transform_4, window_bounds = array<i64: 64, 1>}, {pipeline_mode = #tpu.pipeline_mode<synchronous>, transform_indices = @transform_5, window_bounds = array<i64: 64, 1>}, {transform_indices = @transform_6, window_bounds = array<i64: 1, 1>}, {transform_indices = @transform_7, window_bounds = array<i64: 1, 128>}]} {
    %c0 = arith.constant 0 : index
    %c0_0 = arith.constant 0 : index
    %0 = vector.load %arg1[%c0, %c0_0] : memref<128x32xf32, #tpu.memory_space<vmem>>, vector<128x32xf32>
    %c0_1 = arith.constant 0 : index
    %c0_2 = arith.constant 0 : index
    %1 = vector.load %arg2[%c0_1, %c0_2] : memref<128x32xf32, #tpu.memory_space<vmem>>, vector<128x32xf32>
    %cst = arith.constant dense<0.000000e+00> : vector<128x128xf32>
    %2 = tpu.matmul %1, %0, %cst {dimension_numbers = #tpu.dot_dimension_numbers<[1], [1], [0], [0], [0, 0, 1, 0], [], []>} : vector<128x32xf32>, vector<128x32xf32>, vector<128x128xf32> -> vector<128x128xf32>
    %c0_3 = arith.constant 0 : index
    %c0_4 = arith.constant 0 : index
    %3 = vector.load %arg3[%c0_3, %c0_4] : memref<128x1xf32, #tpu.memory_space<vmem>>, vector<128x1xf32>
    %4 = vector.broadcast %3 : vector<128x1xf32> to vector<128x128xf32>
    %5 = arith.addf %2, %4 : vector<128x128xf32>
    %cst_5 = arith.constant 0.000000e+00 : f32
    %6 = vector.broadcast %cst_5 : f32 to vector<128x128xf32>
    %7 = arith.maximumf %5, %6 : vector<128x128xf32>
    %c0_6 = arith.constant 0 : index
    %c0_7 = arith.constant 0 : index
    %8 = vector.load %arg4[%c0_6, %c0_7] : memref<64x128xf32, #tpu.memory_space<vmem>>, vector<64x128xf32>
    %cst_8 = arith.constant dense<0.000000e+00> : vector<64x128xf32>
    %9 = tpu.matmul %8, %7, %cst_8 {dimension_numbers = #tpu.dot_dimension_numbers<[1], [0], [0], [1], [0, 0, 1, 1], [], []>} : vector<64x128xf32>, vector<128x128xf32>, vector<64x128xf32> -> vector<64x128xf32>
    %c0_9 = arith.constant 0 : index
    %c0_10 = arith.constant 0 : index
    %10 = vector.load %arg5[%c0_9, %c0_10] : memref<64x1xf32, #tpu.memory_space<vmem>>, vector<64x1xf32>
    %11 = vector.broadcast %10 : vector<64x1xf32> to vector<64x128xf32>
    %12 = arith.addf %9, %11 : vector<64x128xf32>
    %cst_11 = arith.constant 0.000000e+00 : f32
    %13 = vector.broadcast %cst_11 : f32 to vector<64x128xf32>
    %14 = arith.maximumf %12, %13 : vector<64x128xf32>
    %c0_12 = arith.constant 0 : index
    %c0_13 = arith.constant 0 : index
    %15 = vector.load %arg6[%c0_12, %c0_13] : memref<64x1xf32, #tpu.memory_space<vmem>>, vector<64x1xf32>
    %16 = vector.broadcast %15 : vector<64x1xf32> to vector<64x128xf32>
    %17 = arith.mulf %14, %16 : vector<64x128xf32>
    %cst_14 = arith.constant dense<0.000000e+00> : vector<128xf32>
    %18 = vector.multi_reduction <add>, %17, %cst_14 [0] : vector<64x128xf32> to vector<128xf32>
    %19 = vector.shape_cast %18 : vector<128xf32> to vector<1x128xf32>
    %c0_15 = arith.constant 0 : index
    %c0_16 = arith.constant 0 : index
    %20 = memref.load %arg7[%c0_15, %c0_16] : memref<1x1xf32, #tpu.memory_space<smem>>
    %21 = vector.broadcast %20 : f32 to vector<1x128xf32>
    %22 = arith.addf %19, %21 : vector<1x128xf32>
    %c0_17 = arith.constant 0 : index
    %c0_18 = arith.constant 0 : index
    %23 = vector.load %arg8[%c0_17, %c0_18] : memref<1x128xf32, #tpu.memory_space<vmem>>, vector<1x128xf32>
    tpu.vector_store %arg8[%c0_17, %c0_18], %22 {strides = array<i32>} : memref<1x128xf32, #tpu.memory_space<vmem>>, vector<1x128xf32>,
    return
  }
  func.func @transform_0(%arg0: i32) -> (i32, i32) {
    %c0_i32 = arith.constant 0 : i32
    %c0_i32_0 = arith.constant 0 : i32
    return %arg0, %c0_i32 : i32, i32
  }
  func.func @transform_1(%arg0: i32) -> (i32, i32) {
    %c0_i32 = arith.constant 0 : i32
    %c0_i32_0 = arith.constant 0 : i32
    %c0_i32_1 = arith.constant 0 : i32
    return %c0_i32, %c0_i32_0 : i32, i32
  }
  func.func @transform_2(%arg0: i32) -> (i32, i32) {
    %c0_i32 = arith.constant 0 : i32
    %c0_i32_0 = arith.constant 0 : i32
    %c0_i32_1 = arith.constant 0 : i32
    return %c0_i32, %c0_i32_0 : i32, i32
  }
  func.func @transform_3(%arg0: i32) -> (i32, i32) {
    %c0_i32 = arith.constant 0 : i32
    %c0_i32_0 = arith.constant 0 : i32
    %c0_i32_1 = arith.constant 0 : i32
    return %c0_i32, %c0_i32_0 : i32, i32
  }
  func.func @transform_4(%arg0: i32) -> (i32, i32) {
    %c0_i32 = arith.constant 0 : i32
    %c0_i32_0 = arith.constant 0 : i32
    %c0_i32_1 = arith.constant 0 : i32
    return %c0_i32, %c0_i32_0 : i32, i32
  }
  func.func @transform_5(%arg0: i32) -> (i32, i32) {
    %c0_i32 = arith.constant 0 : i32
    %c0_i32_0 = arith.constant 0 : i32
    %c0_i32_1 = arith.constant 0 : i32
    return %c0_i32, %c0_i32_0 : i32, i32
  }
  func.func @transform_6(%arg0: i32) -> (i32, i32) {
    %c0_i32 = arith.constant 0 : i32
    %c0_i32_0 = arith.constant 0 : i32
    %c0_i32_1 = arith.constant 0 : i32
    return %c0_i32, %c0_i32_0 : i32, i32
  }
  func.func @transform_7(%arg0: i32) -> (i32, i32) {
    %c0_i32 = arith.constant 0 : i32
    %c0_i32_0 = arith.constant 0 : i32
    return %c0_i32, %arg0 : i32, i32
  }
}

</mosaic_0001>

<bundles_post_ra>
// kernel: tpu_custom_call.1
= control target key start
LH: loop header
LB: loop body
LE: loop exit
PB: predicated region body
PF: predicated region fallthrough
CT: control target
= control target key end

     0   :  { %vm156_vm0 = vcmask 261120   ;;  %v884_v2 = vmov 0   ;;  %s1208_s0 = inlined_call_operand.vmem [shape: f32[8,32], index: 0, kind: input, shape index: {}]   ;;  %s1209_s1 = inlined_call_operand.vmem [shape: f32[128,32], index: 1, kind: input, shape index: {}]   ;;  %s1210_s2 = inlined_call_operand.vmem [shape: f32[128,1], index: 2, kind: input, shape index: {}]   ;;  %s1211_s3 = inlined_call_operand.vmem [shape: f32[64,128], index: 3, kind: input, shape index: {}]   ;;  %s1212_s4 = inlined_call_operand.vmem [shape: f32[64,1], index: 4, kind: input, shape index: {}]   ;;  %s1213_s5 = inlined_call_operand.vmem [shape: f32[64,1], index: 5, kind: input, shape index: {}]   ;;  %s1214_s6 = inlined_call_operand.<no memory space> [shape: f32[1,1], index: 6, kind: input, shape index: {}]   ;;  %s1215_s7 = inlined_call_operand.hbm [shape: f32[1,8], index: 7, kind: output, shape index: {}]  }
   0x1   :  { %v43_v0 = vld [vmem:[%s1208_s0 + $0x78] sm:$0xff]  ;;  %v42_v1 = vld [vmem:[%s1208_s0 + $0x70] sm:$0xff]  ;;  %860 = vset.pattern.permute.xlu0 %v884_v2  ;;  %861 = vset.pattern.permute.xlu1 %v884_v2  ;;  %v41_v3 = vld [vmem:[%s1208_s0 + $0x68] sm:$0xff] }
   0x2   :  { %758 = vmatprep.subr.msk.mxu0 %vm156_vm0, %v43_v0  ;;  %v44_v4 = vld [vmem:[%s1209_s1] sm:$0xff]  ;;  %v75_v6 = vld [vmem:[%s1210_s2 + $0x78] sm:$0xff]  ;;  %v73_v7 = vld [vmem:[%s1210_s2 + $0x68] sm:$0xff] }
   0x3   :  { %759 = vmatpush3.xpose.msk.msra.mxu0 %vm156_vm0, %v43_v0  ;;  %790 = vmatprep.mubr.msk.f32.mxu0 %vm156_vm0, %v44_v4  ;;  %v40_v5 = vld [vmem:[%s1208_s0 + $0x60] sm:$0xff]  ;;  %v39_v8 = vld [vmem:[%s1208_s0 + $0x58] sm:$0xff]  ;;  %v74_v9 = vld [vmem:[%s1210_s2 + $0x70] sm:$0xff] }
   0x4   :  { %760 = vmatprep.subr.msk.mxu0 %vm156_vm0, %v42_v1  ;;  %153 = vperm.xlu0 %860, %v75_v6   ;;  %v72_v10 = vld [vmem:[%s1210_s2 + $0x60] sm:$0xff]  ;;  %v38_v11 = vld [vmem:[%s1208_s0 + $0x50] sm:$0xff]  ;;  %v71_v12 = vld [vmem:[%s1210_s2 + $0x58] sm:$0xff] }
   0x5   :  { %143 = vperm.xlu1 %861, %v73_v7   ;;  %v70_v13 = vld [vmem:[%s1210_s2 + $0x50] sm:$0xff]  ;;  %v37_v14 = vld [vmem:[%s1208_s0 + $0x48] sm:$0xff]  ;;  %v68_v16 = vld [vmem:[%s1210_s2 + $0x40] sm:$0xff] }
   0x6   :  { %v69_v15 = vld [vmem:[%s1210_s2 + $0x48] sm:$0xff] }
   0x7   :  { %761 = vmatpush3.xpose.msk.msra.mxu0 %vm156_vm0, %v42_v1 }
   0x8   :  { %762 = vmatprep.subr.msk.mxu0 %vm156_vm0, %v41_v3  ;;  %148 = vperm.xlu0 %860, %v74_v9  }
   0x9   :  { %138 = vperm.xlu1 %861, %v72_v10  }
   0xb   :  { %763 = vmatpush3.xpose.msk.msra.mxu0 %vm156_vm0, %v41_v3 }
   0xc   :  { %764 = vmatprep.subr.msk.mxu0 %vm156_vm0, %v40_v5  ;;  %133 = vperm.xlu0 %860, %v71_v12  }
   0xd   :  { %128 = vperm.xlu1 %861, %v70_v13  }
   0xf   :  { %765 = vmatpush3.xpose.msk.msra.mxu0 %vm156_vm0, %v40_v5 }
  0x10   :  { %766 = vmatprep.subr.msk.mxu0 %vm156_vm0, %v39_v8 }
  0x13   :  { %767 = vmatpush3.xpose.msk.msra.mxu0 %vm156_vm0, %v39_v8 }
  0x14   :  { %768 = vmatprep.subr.msk.mxu0 %vm156_vm0, %v38_v11 }
  0x15   :  { %13 = vsyncpa [#allocation4], 0  ;;  %123 = vperm.xlu0 %860, %v69_v15   ;;  %v36_v17 = vld [vmem:[%s1208_s0 + $0x40] sm:$0xff]  ;;  %118 = vperm.xlu1 %861, %v68_v16   ;;  %v67_v18 = vld [vmem:[%s1210_s2 + $0x38] sm:$0xff]  ;;  %s885_s19 = smov [#allocation3]  }
  0x16   :  { %v66_v19 = vld [vmem:[%s1210_s2 + $0x30] sm:$0xff]  ;;  %v35_v20 = vld [vmem:[%s1208_s0 + $0x38] sm:$0xff]  ;;  %v65_v21 = vld [vmem:[%s1210_s2 + $0x28] sm:$0xff]  ;;  %s662_s20 = sshll.u32 %s885_s19, 4  ;;  %s663_s20 = int_to_ptr.vmem [resolvable:$true] %s662_s20 }
  0x17   :  { %769 = vmatpush3.xpose.msk.msra.mxu0 %vm156_vm0, %v38_v11  ;;  %v64_v22 = vld [vmem:[%s1210_s2 + $0x20] sm:$0xff]  ;;  %v34_v23 = vld [vmem:[%s1208_s0 + $0x30] sm:$0xff]  ;;  %v63_v24 = vld [vmem:[%s1210_s2 + $0x18] sm:$0xff]  ;;  %s862_s21 = scalar_lea.vmem %s663_s20, 16  ;;  %s866_s22 = scalar_lea.vmem %s663_s20, 32 }
  0x18   :  { %770 = vmatprep.subr.msk.mxu0 %vm156_vm0, %v37_v14  ;;  %v62_v25 = vld [vmem:[%s1210_s2 + $0x10] sm:$0xff]  ;;  %v33_v26 = vld [vmem:[%s1208_s0 + $0x28] sm:$0xff]  ;;  %v60_v28 = vld [vmem:[%s1210_s2] sm:$0xff]  ;;  %p863_p0 = scmp.ne.s32.totalorder %s663_s20, %s862_s21  ;;  %p867_p1 = scmp.lt.s32.totalorder %s663_s20, %s663_s20 }
  0x19   :  { %113 = vperm.xlu0 %860, %v67_v18   ;;  %108 = vperm.xlu1 %861, %v66_v19   ;;  %v61_v27 = vld [vmem:[%s1210_s2 + $0x8] sm:$0xff]  ;;  %v32_v29 = vld [vmem:[%s1208_s0 + $0x20] sm:$0xff]  ;;  %v31_v32 = vld [vmem:[%s1208_s0 + $0x18] sm:$0xff]  ;;  %p868_p2 = scmp.lt.s32.totalorder %s866_s22, %s862_s21 }
  0x1a   :  { %v422_v30 = vld [vmem:[%s1212_s4] sm:$0xff]  ;;  %v423_v31 = vld [vmem:[%s1212_s4 + $0x8] sm:$0xff]  ;;  %v424_v33 = vld [vmem:[%s1212_s4 + $0x10] sm:$0xff] }
  0x1b   :  { %771 = vmatpush3.xpose.msk.msra.mxu0 %vm156_vm0, %v37_v14  ;;  %v425_v34 = vld [vmem:[%s1212_s4 + $0x18] sm:$0xff]  ;;  %v30_v35 = vld [vmem:[%s1208_s0 + $0x10] sm:$0xff]  ;;  %v583_v36 = vld [vmem:[%s1213_s5] sm:$0xff]  ;;  %p869_p3 = por %p868_p2, %p867_p1 }
  0x1c   :  { %772 = vmatprep.subr.msk.mxu0 %vm156_vm0, %v36_v17  ;;  %v584_v37 = vld [vmem:[%s1213_s5 + $0x8] sm:$0xff]  ;;  %v426_v39 = vld [vmem:[%s1212_s4 + $0x20] sm:$0xff]  ;;  %v585_v40 = vld [vmem:[%s1213_s5 + $0x10] sm:$0xff] }
  0x1d   :  { %103 = vperm.xlu0 %860, %v65_v21   ;;  %98 = vperm.xlu1 %861, %v64_v22   ;;  %v29_v38 = vld [vmem:[%s1208_s0 + $0x8] sm:$0xff]  ;;  %v28_v41 = vld [vmem:[%s1208_s0] sm:$0xff]  ;;  %v586_v43 = vld [vmem:[%s1213_s5 + $0x18] sm:$0xff]  ;;  %p870_p4 = pnand %p869_p3, %p863_p0 }
  0x1e   :  { %v427_v42 = vld [vmem:[%s1212_s4 + $0x28] sm:$0xff]  ;;  %v428_v44 = vld [vmem:[%s1212_s4 + $0x30] sm:$0xff]  ;;  %v587_v45 = vld [vmem:[%s1213_s5 + $0x20] sm:$0xff] }
  0x1f   :  { %773 = vmatpush3.xpose.msk.msra.mxu0 %vm156_vm0, %v36_v17  ;;  %v45_v46 = vld [vmem:[%s1209_s1 + $0x8] sm:$0xff]  ;;  %v46_v47 = vld [vmem:[%s1209_s1 + $0x10] sm:$0xff]  ;;  %v429_v48 = vld [vmem:[%s1212_s4 + $0x38] sm:$0xff] }
  0x20   :  { %774 = vmatprep.subr.msk.mxu0 %vm156_vm0, %v35_v20  ;;  %v588_v49 = vld [vmem:[%s1213_s5 + $0x28] sm:$0xff]  ;;  %v47_v50 = vld [vmem:[%s1209_s1 + $0x18] sm:$0xff]  ;;  %v48_v51 = vld [vmem:[%s1209_s1 + $0x20] sm:$0xff] }
  0x21   :  { %93 = vperm.xlu0 %860, %v63_v24   ;;  %88 = vperm.xlu1 %861, %v62_v25   ;;  %v589_v52 = vld [vmem:[%s1213_s5 + $0x30] sm:$0xff]  ;;  %v590_v53 = vld [vmem:[%s1213_s5 + $0x38] sm:$0xff]  ;;  %v49_v54 = vld [vmem:[%s1209_s1 + $0x28] sm:$0xff] }
  0x22   :  { %v50_v55 = vld [vmem:[%s1209_s1 + $0x30] sm:$0xff]  ;;  %v51_v56 = vld [vmem:[%s1209_s1 + $0x38] sm:$0xff]  ;;  %v52_v57 = vld [vmem:[%s1209_s1 + $0x40] sm:$0xff] }
  0x23   :  { %775 = vmatpush3.xpose.msk.msra.mxu0 %vm156_vm0, %v35_v20  ;;  %v53_v58 = vld [vmem:[%s1209_s1 + $0x48] sm:$0xff]  ;;  %v54_v59 = vld [vmem:[%s1209_s1 + $0x50] sm:$0xff]  ;;  %v55_v60 = vld [vmem:[%s1209_s1 + $0x58] sm:$0xff] }
  0x24   :  { %776 = vmatprep.subr.msk.mxu0 %vm156_vm0, %v34_v23  ;;  %v56_v61 = vld [vmem:[%s1209_s1 + $0x60] sm:$0xff]  ;;  %v57_v62 = vld [vmem:[%s1209_s1 + $0x68] sm:$0xff]  ;;  %v58_v63 = vld [vmem:[%s1209_s1 + $0x70] sm:$0xff] }
  0x25   :  { %83 = vperm.xlu0 %860, %v61_v27   ;;  %78 = vperm.xlu1 %861, %v60_v28   ;;  %v59_v0 = vld [vmem:[%s1209_s1 + $0x78] sm:$0xff]  ;;  %v414_v1 = vld [vmem:[%s1211_s3] sm:$0xff] }
  0x26   :  { %846 = vmatprep.mubr.f32.mxu1 %v414_v1 }
  0x27   :  { %777 = vmatpush3.xpose.msk.msra.mxu0 %vm156_vm0, %v34_v23 }
  0x28   :  { %778 = vmatprep.subr.msk.mxu0 %vm156_vm0, %v33_v26 }
  0x29   :  { %432 = vperm.xlu0 %860, %v422_v30   ;;  %437 = vperm.xlu1 %861, %v423_v31  }
  0x2b   :  { %779 = vmatpush3.xpose.msk.msra.mxu0 %vm156_vm0, %v33_v26 }
  0x2c   :  { %780 = vmatprep.subr.msk.mxu0 %vm156_vm0, %v32_v29 }
  0x2d   :  { %442 = vperm.xlu0 %860, %v424_v33   ;;  %447 = vperm.xlu1 %861, %v425_v34  }
  0x2f   :  { %781 = vmatpush3.xpose.msk.msra.mxu0 %vm156_vm0, %v32_v29 }
  0x30   :  { %782 = vmatprep.subr.msk.mxu0 %vm156_vm0, %v31_v32 }
  0x31   :  { %593 = vperm.xlu0 %860, %v583_v36   ;;  %598 = vperm.xlu1 %861, %v584_v37  }
  0x33   :  { %783 = vmatpush3.xpose.msk.msra.mxu0 %vm156_vm0, %v31_v32 }
  0x34   :  { %784 = vmatprep.subr.msk.mxu0 %vm156_vm0, %v30_v35 }
  0x35   :  { %452 = vperm.xlu0 %860, %v426_v39   ;;  %603 = vperm.xlu1 %861, %v585_v40  }
  0x37   :  { %785 = vmatpush3.xpose.msk.msra.mxu0 %vm156_vm0, %v30_v35 }
  0x38   :  { %786 = vmatprep.subr.msk.mxu0 %vm156_vm0, %v29_v38 }
  0x39   :  { %457 = vperm.xlu0 %860, %v427_v42   ;;  %608 = vperm.xlu1 %861, %v586_v43  }
  0x3b   :  { %787 = vmatpush3.xpose.msk.msra.mxu0 %vm156_vm0, %v29_v38 }
  0x3c   :  { %788 = vmatprep.subr.msk.mxu0 %vm156_vm0, %v28_v41 }
  0x3d   :  { %462 = vperm.xlu0 %860, %v428_v44   ;;  %613 = vperm.xlu1 %861, %v587_v45  }
  0x3f   :  { %789 = vmatpush3.xpose.msk.msra.mxu0 %vm156_vm0, %v28_v41 }
  0x41   :  { %467 = vperm.xlu0 %860, %v429_v48   ;;  %618 = vperm.xlu1 %861, %v588_v49  }
  0x42   :  { %791 = vmatmul.mubr.msk.f32.vlgmr.msra.gmra.mxu0 %vm156_vm0, %v45_v46 }
  0x43   :  { %793 = vmatprep.mubr.msk.f32.mxu0 %vm156_vm0, %v46_v47 }
  0x45   :  { %623 = vperm.xlu0 %860, %v589_v52   ;;  %628 = vperm.xlu1 %861, %v590_v53  }
  0x46   :  { %794 = vmatmul.mubr.msk.f32.gmra.mxu0 %vm156_vm0, %v47_v50 }
  0x47   :  { %796 = vmatprep.mubr.msk.f32.mxu0 %vm156_vm0, %v48_v51 }
  0x4a   :  { %797 = vmatmul.mubr.msk.f32.gmra.mxu0 %vm156_vm0, %v49_v54 }
  0x4b   :  { %799 = vmatprep.mubr.msk.f32.mxu0 %vm156_vm0, %v50_v55 }
  0x4e   :  { %800 = vmatmul.mubr.msk.f32.gmra.mxu0 %vm156_vm0, %v51_v56 }
  0x4f   :  { %802 = vmatprep.mubr.msk.f32.mxu0 %vm156_vm0, %v52_v57 }
  0x52   :  { %803 = vmatmul.mubr.msk.f32.gmra.mxu0 %vm156_vm0, %v53_v58 }
  0x53   :  { %805 = vmatprep.mubr.msk.f32.mxu0 %vm156_vm0, %v54_v59 }
  0x56   :  { %806 = vmatmul.mubr.msk.f32.gmra.mxu0 %vm156_vm0, %v55_v60 }
  0x57   :  { %808 = vmatprep.mubr.msk.f32.mxu0 %vm156_vm0, %v56_v61 }
  0x5a   :  { %809 = vmatmul.mubr.msk.f32.gmra.mxu0 %vm156_vm0, %v57_v62 }
  0x5b   :  { %811 = vmatprep.mubr.msk.f32.mxu0 %vm156_vm0, %v58_v63 }
  0x5e   :  { %812 = vmatmul.mubr.msk.f32.gmra.mxu0 %vm156_vm0, %v59_v0 }
  0x7f   :  { %v154_v8 = vpop.permute.xlu0 %153 }
  0x80   :  { %v144_v10 = vpop.permute.xlu1 %143 }
  0x83   :  { %v149_v13 = vpop.permute.xlu0 %148 }
  0x84   :  { %v139_v15 = vpop.permute.xlu1 %138 }
  0x87   :  { %v134_v18 = vpop.permute.xlu0 %133 }
  0x88   :  { %v129_v20 = vpop.permute.xlu1 %128 }
  0x90   :  { %v124_v24 = vpop.permute.xlu0 %123  ;;  %v119_v29 = vpop.permute.xlu1 %118 }
  0x94   :  { %v114_v34 = vpop.permute.xlu0 %113  ;;  %v109_v37 = vpop.permute.xlu1 %108 }
  0x98   :  { %v104_v42 = vpop.permute.xlu0 %103  ;;  %v99_v45 = vpop.permute.xlu1 %98 }
  0x9c   :  { %v94_v50 = vpop.permute.xlu0 %93  ;;  %v89_v53 = vpop.permute.xlu1 %88 }
  0xa0   :  { %v84_v58 = vpop.permute.xlu0 %83  ;;  %v79_v61 = vpop.permute.xlu1 %78 }
 0x102   :  { %v1169_v2 = vpop.f32.mrf.mxu0 }
 0x103   :  { %v325_v59 = vadd.f32 %v1169_v2, %v84_v58  ;;  %v416_v2 = vld [vmem:[%s1211_s3 + $0x10] sm:$0xff] }
 0x104   :  { %v1171_v3 = vpop.f32.mrf.mxu0 }
 0x105   :  { %v320_v62 = vadd.f32 %v1171_v3, %v79_v61  ;;  %v399_v0 = vmax.f32 %v325_v59, 0.0  ;;  %v417_v3 = vld [vmem:[%s1211_s3 + $0x18] sm:$0xff] }
 0x106   :  { %v1173_v4 = vpop.f32.mrf.mxu0 }
 0x107   :  { %v335_v54 = vadd.f32 %v1173_v4, %v94_v50  ;;  %v398_v1 = vmax.f32 %v320_v62, 0.0  ;;  %v415_v4 = vld [vmem:[%s1211_s3 + $0x8] sm:$0xff] }
 0x108   :  { %v1175_v5 = vpop.f32.mrf.mxu0 }
 0x109   :  { %v330_v56 = vadd.f32 %v1175_v5, %v89_v53  ;;  %v401_v60 = vmax.f32 %v335_v54, 0.0  ;;  %v418_v5 = vld [vmem:[%s1211_s3 + $0x20] sm:$0xff] }
 0x10a   :  { %v798_v6 = vpop.f32.mrf.mxu0 }
 0x10b   :  { %v345_v48 = vadd.f32 %v798_v6, %v104_v42  ;;  %v400_v63 = vmax.f32 %v330_v56, 0.0  ;;  %v419_v6 = vld [vmem:[%s1211_s3 + $0x28] sm:$0xff] }
 0x10c   :  { %v339_v7 = vpop.f32.mrf.mxu0 }
 0x10d   :  { %v340_v51 = vadd.f32 %v339_v7, %v99_v45  ;;  %v403_v55 = vmax.f32 %v345_v48, 0.0  ;;  %v420_v7 = vld [vmem:[%s1211_s3 + $0x30] sm:$0xff] }
 0x10e   :  { %v801_v9 = vpop.f32.mrf.mxu0 }
 0x10f   :  { %v355_v43 = vadd.f32 %v801_v9, %v114_v34  ;;  %v402_v57 = vmax.f32 %v340_v51, 0.0  ;;  %v433_v9 = vpop.permute.xlu0 %432 }
 0x110   :  { %v349_v11 = vpop.f32.mrf.mxu0 }
 0x111   :  { %v350_v46 = vadd.f32 %v349_v11, %v109_v37  ;;  %v405_v49 = vmax.f32 %v355_v43, 0.0 }
 0x112   :  { %v804_v12 = vpop.f32.mrf.mxu0 }
 0x113   :  { %v365_v38 = vadd.f32 %v804_v12, %v124_v24  ;;  %v404_v52 = vmax.f32 %v350_v46, 0.0  ;;  %v443_v11 = vpop.permute.xlu0 %442 }
 0x114   :  { %v359_v14 = vpop.f32.mrf.mxu0 }
 0x115   :  { %v360_v40 = vadd.f32 %v359_v14, %v119_v29  ;;  %v407_v44 = vmax.f32 %v365_v38, 0.0 }
 0x116   :  { %v807_v16 = vpop.f32.mrf.mxu0 }
 0x117   :  { %v375_v32 = vadd.f32 %v807_v16, %v134_v18  ;;  %v406_v47 = vmax.f32 %v360_v40, 0.0 }
 0x118   :  { %v369_v17 = vpop.f32.mrf.mxu0 }
 0x119   :  { %v370_v35 = vadd.f32 %v369_v17, %v129_v20  ;;  %v409_v39 = vmax.f32 %v375_v32, 0.0 }
 0x11a   :  { %v810_v19 = vpop.f32.mrf.mxu0 }
 0x11b   :  { %v385_v26 = vadd.f32 %v810_v19, %v144_v10  ;;  %v408_v41 = vmax.f32 %v370_v35, 0.0  ;;  %v438_v10 = vpop.permute.xlu1 %437 }
 0x11c   :  { %v379_v21 = vpop.f32.mrf.mxu0 }
 0x11d   :  { %v380_v30 = vadd.f32 %v379_v21, %v139_v15  ;;  %v411_v33 = vmax.f32 %v385_v26, 0.0 }
 0x11e   :  { %v813_v22 = vpop.f32.mrf.mxu0 }
 0x11f   :  { %v395_v23 = vadd.f32 %v813_v22, %v154_v8  ;;  %v410_v36 = vmax.f32 %v380_v30, 0.0  ;;  %v421_v8 = vld [vmem:[%s1211_s3 + $0x38] sm:$0xff]  ;;  %v448_v12 = vpop.permute.xlu1 %447 }
 0x120   :  { %v389_v25 = vpop.f32.mrf.mxu0 }
 0x121   :  { %v413_v27 = vmax.f32 %v395_v23, 0.0  ;;  %v390_v28 = vadd.f32 %v389_v25, %v149_v13  ;;  %v594_v13 = vpop.permute.xlu0 %593 }
 0x123   :  { %v412_v31 = vmax.f32 %v390_v28, 0.0  ;;  %814 = vmatprep.subr.mxu1 %v413_v27  ;;  %v599_v14 = vpop.permute.xlu1 %598 }
 0x124   :  { %815 = vmatpush3.msra.mxu1 %v413_v27 }
 0x125   :  { %816 = vmatprep.subr.mxu1 %v412_v31  ;;  %v453_v15 = vpop.permute.xlu0 %452 }
 0x126   :  { %817 = vmatpush3.msra.mxu1 %v412_v31 }
 0x127   :  { %818 = vmatprep.subr.mxu1 %v411_v33  ;;  %v604_v16 = vpop.permute.xlu1 %603 }
 0x128   :  { %819 = vmatpush3.msra.mxu1 %v411_v33 }
 0x129   :  { %820 = vmatprep.subr.mxu1 %v410_v36  ;;  %v458_v17 = vpop.permute.xlu0 %457 }
 0x12a   :  { %821 = vmatpush3.msra.mxu1 %v410_v36 }
 0x12b   :  { %822 = vmatprep.subr.mxu1 %v409_v39  ;;  %v609_v20 = vpop.permute.xlu1 %608 }
 0x12c   :  { %823 = vmatpush3.msra.mxu1 %v409_v39 }
 0x12d   :  { %824 = vmatprep.subr.mxu1 %v408_v41  ;;  %v463_v27 = vpop.permute.xlu0 %462 }
 0x12e   :  { %825 = vmatpush3.msra.mxu1 %v408_v41 }
 0x12f   :  { %826 = vmatprep.subr.mxu1 %v407_v44  ;;  %v614_v31 = vpop.permute.xlu1 %613 }
 0x130   :  { %827 = vmatpush3.msra.mxu1 %v407_v44 }
 0x131   :  { %828 = vmatprep.subr.mxu1 %v406_v47  ;;  %v468_v41 = vpop.permute.xlu0 %467 }
 0x132   :  { %829 = vmatpush3.msra.mxu1 %v406_v47 }
 0x133   :  { %830 = vmatprep.subr.mxu1 %v405_v49  ;;  %v619_v48 = vpop.permute.xlu1 %618 }
 0x134   :  { %831 = vmatpush3.msra.mxu1 %v405_v49 }
 0x135   :  { %832 = vmatprep.subr.mxu1 %v404_v52 }
 0x136   :  { %833 = vmatpush3.msra.mxu1 %v404_v52 }
 0x137   :  { %834 = vmatprep.subr.mxu1 %v403_v55 }
 0x138   :  { %835 = vmatpush3.msra.mxu1 %v403_v55 }
 0x139   :  { %836 = vmatprep.subr.mxu1 %v402_v57 }
 0x13a   :  { %837 = vmatpush3.msra.mxu1 %v402_v57  ;;  %v624_v57 = vpop.permute.xlu0 %623 }
 0x13b   :  { %838 = vmatprep.subr.mxu1 %v401_v60 }
 0x13c   :  { %839 = vmatpush3.msra.mxu1 %v401_v60  ;;  %v629_v60 = vpop.permute.xlu1 %628 }
 0x13d   :  { %840 = vmatprep.subr.mxu1 %v400_v63 }
 0x13e   :  { %841 = vmatpush3.msra.mxu1 %v400_v63 }
 0x13f   :  { %842 = vmatprep.subr.mxu1 %v399_v0 }
 0x140   :  { %843 = vmatpush3.msra.mxu1 %v399_v0 }
 0x141   :  { %844 = vmatprep.subr.mxu1 %v398_v1 }
 0x142   :  { %845 = vmatpush3.msra.mxu1 %v398_v1 }
 0x143   :  { %847 = vmatmul.mubr.f32.vlgmr.msra.gmra.mxu1 %v415_v4 }
 0x144   :  { %849 = vmatprep.mubr.f32.mxu1 %v416_v2 }
 0x147   :  { %850 = vmatmul.mubr.f32.gmra.mxu1 %v417_v3 }
 0x148   :  { %852 = vmatprep.mubr.f32.mxu1 %v418_v5  ;;  %v653_v5 = vstv %s1214_s6 }
 0x14b   :  { %853 = vmatmul.mubr.f32.gmra.mxu1 %v419_v6 }
 0x14c   :  { %855 = vmatprep.mubr.f32.mxu1 %v420_v7 }
 0x14f   :  { %856 = vmatmul.mubr.f32.gmra.mxu1 %v421_v8 }
 0x203   :  { %v848_v18 = vpop.f32.mrf.mxu1 }
 0x204   :  { %v542_v19 = vadd.f32 %v848_v18, %v438_v10 }
 0x205   :  { %v536_v21 = vpop.f32.mrf.mxu1 }
 0x206   :  { %v537_v22 = vadd.f32 %v536_v21, %v433_v9  ;;  %v576_v24 = vmax.f32 %v542_v19, 0.0 }
 0x207   :  { %v851_v23 = vpop.f32.mrf.mxu1 }
 0x208   :  { %v575_v25 = vmax.f32 %v537_v22, 0.0  ;;  %v552_v26 = vadd.f32 %v851_v23, %v448_v12  ;;  %v632_v34 = vmul.f32 %v599_v14, %v576_v24 }
 0x209   :  { %v546_v28 = vpop.f32.mrf.mxu1 }
 0x20a   :  { %v631_v29 = vmul.f32 %v594_v13, %v575_v25  ;;  %v547_v30 = vadd.f32 %v546_v28, %v443_v11  ;;  %v578_v32 = vmax.f32 %v552_v26, 0.0 }
 0x20b   :  { %v854_v33 = vpop.f32.mrf.mxu1 }
 0x20c   :  { %v577_v35 = vmax.f32 %v547_v30, 0.0  ;;  %v562_v36 = vadd.f32 %v854_v33, %v458_v17  ;;  %v639_v38 = vadd.f32 %v632_v34, %v631_v29  ;;  %v634_v42 = vmul.f32 %v609_v20, %v578_v32 }
 0x20d   :  { %v556_v37 = vpop.f32.mrf.mxu1 }
 0x20e   :  { %v633_v39 = vmul.f32 %v604_v16, %v577_v35  ;;  %v557_v40 = vadd.f32 %v556_v37, %v453_v15  ;;  %v580_v45 = vmax.f32 %v562_v36, 0.0 }
 0x20f   :  { %v857_v43 = vpop.f32.mrf.mxu1 }
 0x210   :  { %v640_v44 = vadd.f32 %v639_v38, %v633_v39  ;;  %v579_v46 = vmax.f32 %v557_v40, 0.0  ;;  %v572_v47 = vadd.f32 %v857_v43, %v468_v41  ;;  %v636_v53 = vmul.f32 %v619_v48, %v580_v45 }
 0x211   :  { %v566_v49 = vpop.f32.mrf.mxu1 }
 0x212   :  { %v635_v50 = vmul.f32 %v614_v31, %v579_v46  ;;  %v641_v51 = vadd.f32 %v640_v44, %v634_v42  ;;  %v567_v52 = vadd.f32 %v566_v49, %v463_v27  ;;  %v582_v55 = vmax.f32 %v572_v47, 0.0 }
 0x214   :  { %v642_v54 = vadd.f32 %v641_v51, %v635_v50  ;;  %v581_v56 = vmax.f32 %v567_v52, 0.0  ;;  %v638_v61 = vmul.f32 %v629_v60, %v582_v55 }
 0x216   :  { %v637_v58 = vmul.f32 %v624_v57, %v581_v56  ;;  %v643_v59 = vadd.f32 %v642_v54, %v636_v53 }
 0x218   :  { %v644_v62 = vadd.f32 %v643_v59, %v637_v58 }
 0x21a   :  { %v645_v63 = vadd.f32 %v644_v62, %v638_v61 }
 0x21c   :  { %v646_v0 = vrot.slane %v645_v63, 4 }
 0x21e   :  { %v647_v1 = vadd.f32 %v646_v0, %v645_v63 }
 0x220   :  { %v648_v4 = vrot.slane %v647_v1, 2 }
 0x222   :  { %v649_v2 = vadd.f32 %v648_v4, %v647_v1 }
 0x224   :  { %v650_v3 = vrot.slane %v649_v2, 1 }
 0x226   :  { %v651_v6 = vadd.f32 %v650_v3, %v649_v2 }
 0x228   :  { %v654_v7 = vadd.f32 %v653_v5, %v651_v6 }
 0x22a   :  { %655 = vst [vmem:[#allocation3] sm:$0x1] %v654_v7 }
 0x22b   :  { %873 = shalt.err (!%p870_p4)
}
 0x22c   :  { %665 = dma.vmem_to_hbm [thread:$0]  %s663_s20, 16, %s1215_s7, [#allocation4]  }
 0x22d   :  { %882 = dma.done.wait [#allocation4], 16  }
 0x22e   :  { %883 = vsyncadd [#allocation4], 4294967280 }
 0x22f   :  { %669 = vsyncpa [#allocation4], 1 }

</bundles_post_ra>
